<compile_context>
chip_gen: v6e
topology: v6e:2x2x1
jax: 0.10.0
libtpu: 0.0.40
codegen_flags: <defaults>
</compile_context>

<pallas_src>
import math

import jax
import jax.numpy as jnp
from jax.experimental import pallas as pl
from jax.experimental.pallas import tpu as pltpu

EPS = 1e-12  # layer_norm_eps


def _rmsnorm(x, gain):
    ms = jnp.mean(x * x, axis=-1, keepdims=True)
    return x * jax.lax.rsqrt(ms + EPS) * gain


def _gelu_exact(x):
    # torch.nn.GELU() default is the exact erf form
    return 0.5 * x * (1.0 + jax.lax.erf(x * (1.0 / math.sqrt(2.0))))


def make_encoder_kernel(n_heads):
    def kernel(x_ref, mask_ref, wqkv_ref, wo_ref, g_attn_ref,
               w1_ref, w2_ref, g_ffn_ref, o_ref):
        bblk, S, D = x_ref.shape
        d = D // n_heads
        M = bblk * S
        inv_sqrt_d = 1.0 / math.sqrt(d)

        x = x_ref[...].astype(jnp.float32).reshape(M, D)     # flatten rows for MXU
        mask = mask_ref[...].astype(jnp.float32)              # (bblk, S, S)

        # ---- MultiHeadAttention (residual uses RMS-normalized x, as in PyTorch) ----
        xn = _rmsnorm(x, g_attn_ref[...])                     # (M, D) f32
        xn_b = xn.astype(jnp.bfloat16)                        # bf16 MXU operand

        # single fused projection: (M, D) @ (D, 3D) -> [Q | K | V] along lanes
        qkv = jnp.dot(xn_b, wqkv_ref[...], preferred_element_type=jnp.float32)

        head_outs = []
        for h in range(n_heads):                              # small & static
            lo = h * d
            qh = qkv[:, lo:lo + d].reshape(bblk, S, d).astype(jnp.bfloat16)
            kh = qkv[:, D + lo:D + lo + d].reshape(bblk, S, d).astype(jnp.bfloat16)
            vh = qkv[:, 2 * D + lo:2 * D + lo + d].reshape(bblk, S, d).astype(jnp.bfloat16)

            s = jnp.einsum('bqd,bkd->bqk', qh, kh,
                           preferred_element_type=jnp.float32) * inv_sqrt_d + mask
            s = s - jnp.max(s, axis=-1, keepdims=True)
            e = jnp.exp(s)
            p = e * pl.reciprocal(jnp.sum(e, axis=-1, keepdims=True), approx=True)
            oh = jnp.einsum('bqk,bkd->bqd', p.astype(jnp.bfloat16), vh,
                            preferred_element_type=jnp.float32)  # (bblk, S, d)
            head_outs.append(oh.reshape(M, d))

        # concat heads once, single full-K output projection
        attn_cat = jnp.concatenate(head_outs, axis=-1)         # (M, D) f32
        attn_out = jnp.dot(attn_cat.astype(jnp.bfloat16), wo_ref[...],
                           preferred_element_type=jnp.float32)
        h1 = xn + attn_out                                      # residual on normalized x

        # ---- FeedForward ----
        hn = _rmsnorm(h1, g_ffn_ref[...])
        f = jnp.dot(hn.astype(jnp.bfloat16), w1_ref[...],
                    preferred_element_type=jnp.float32)
        f = _gelu_exact(f)
        f = jnp.dot(f.astype(jnp.bfloat16), w2_ref[...],
                    preferred_element_type=jnp.float32)

        o_ref[...] = (h1 + f).reshape(bblk, S, D).astype(o_ref.dtype)

    return kernel


def _pick_block_b(B, S, target_rows=256):
    """Batch items per grid step: grow M toward the MXU tile, keep >=2 grid steps."""
    bb = max(1, min(B, target_rows // max(S, 1)))
    while B % bb:
        bb -= 1
    if B // bb < 2 and bb > 1:          # leave work for both v7x TensorCores
        bb = max(1, bb // 2)
        while bb > 1 and B % bb:
            bb -= 1
    return bb


def transformer_single_encoder(x, attn_mask, params, n_heads, block_b=None):
    B, S, D = x.shape
    inner = params["w1"].shape[1]
    if block_b is None:
        block_b = _pick_block_b(B, S)
    assert B % block_b == 0

    wdt = jnp.bfloat16
    # fused QKV weight: columns [0:D)=Q, [D:2D)=K, [2D:3D)=V (heads contiguous within each)
    wqkv = jnp.concatenate(
        [params["wq"], params["wk"], params["wv"]], axis=1).astype(wdt)
    wo = params["wo"].astype(wdt)
    w1 = params["w1"].astype(wdt)
    w2 = params["w2"].astype(wdt)
    g_attn = params["g_attn"].astype(jnp.float32)
    g_ffn = params["g_ffn"].astype(jnp.float32)

    kernel = make_encoder_kernel(n_heads)

    def const(shape):
        return pl.BlockSpec(shape, lambda b: (0,) * len(shape))

    return pl.pallas_call(
        kernel,
        out_shape=jax.ShapeDtypeStruct((B, S, D), x.dtype),
        grid=(B // block_b,),
        in_specs=[
            pl.BlockSpec((block_b, S, D), lambda b: (b, 0, 0)),   # x
            pl.BlockSpec((block_b, S, S), lambda b: (b, 0, 0)),   # additive attn mask
            const((D, 3 * D)),                                     # fused Wq|Wk|Wv
            const((D, D)),                                         # wo
            const((1, D)),                                         # RMSNorm gain (attn)
            const((D, inner)),                                     # ffn w1
            const((inner, D)),                                     # ffn w2
            const((1, D)),                                         # RMSNorm gain (ffn)
        ],
        out_specs=pl.BlockSpec((block_b, S, D), lambda b: (b, 0, 0)),
        compiler_params=pltpu.CompilerParams(dimension_semantics=("parallel",)),
    )(x, attn_mask, wqkv, wo, g_attn, w1, w2, g_ffn)


def reference(x, attn_mask, params, n_heads):
    """Pure-JAX f32 replica of the PyTorch forward, for a sanity check."""
    B, S, D = x.shape
    d = D // n_heads

    def rms(v, g):
        return v / jnp.sqrt(jnp.mean(v * v, axis=-1, keepdims=True) + EPS) * g

    xn = rms(x, params["g_attn"][0])
    q = xn @ params["wq"]
    k = xn @ params["wk"]
    v = xn @ params["wv"]
    q = q.reshape(B, S, n_heads, d).transpose(0, 2, 1, 3)
    k = k.reshape(B, S, n_heads, d).transpose(0, 2, 1, 3)
    v = v.reshape(B, S, n_heads, d).transpose(0, 2, 1, 3)
    s = q @ jnp.swapaxes(k, -1, -2) / math.sqrt(d) + attn_mask[:, None]
    p = jax.nn.softmax(s, axis=-1)
    a = (p @ v).transpose(0, 2, 1, 3).reshape(B, S, D) @ params["wo"]
    h1 = xn + a
    hn = rms(h1, params["g_ffn"][0])
    f = jax.nn.gelu(hn @ params["w1"], approximate=False) @ params["w2"]
    return h1 + f


if __name__ == "__main__":
    B, S, D, H = 2, 8, 64, 2
    INNER = 4 * D  # FeedForward uses hidden_size * 4 internally

    key = jax.random.PRNGKey(0)
    kx, kq, kk, kv, ko, k1, k2 = jax.random.split(key, 7)
    scale = 1.0 / math.sqrt(D)

    params = {
        "wq": jax.random.normal(kq, (D, D), jnp.float32) * scale,
        "wk": jax.random.normal(kk, (D, D), jnp.float32) * scale,
        "wv": jax.random.normal(kv, (D, D), jnp.float32) * scale,
        "wo": jax.random.normal(ko, (D, D), jnp.float32) * scale,
        "w1": jax.random.normal(k1, (D, INNER), jnp.float32) * scale,
        "w2": jax.random.normal(k2, (INNER, D), jnp.float32) * (1.0 / math.sqrt(INNER)),
        "g_attn": jnp.ones((1, D), jnp.float32),  # nn.RMSNorm weight init = ones
        "g_ffn": jnp.ones((1, D), jnp.float32),
    }

    x = jax.random.normal(kx, (B, S, D), jnp.float32)
    # additive causal mask, broadcast over heads (shape (B, S, S))
    causal = jnp.where(jnp.tril(jnp.ones((S, S), jnp.bool_)), 0.0, -1e9).astype(jnp.float32)
    attn_mask = jnp.broadcast_to(causal, (B, S, S))

    out = transformer_single_encoder(x, attn_mask, params, n_heads=H)
    out = jax.block_until_ready(out)

    ref = reference(x, attn_mask, params, n_heads=H)
    assert out.shape == (B, S, D)
    # bf16 MXU operands with f32 accumulation: loosened tolerance (precision choice).
    assert jnp.allclose(out, ref, atol=5e-2, rtol=5e-2), "mismatch vs pure-JAX reference"

    print("KERNEL_OK")
</pallas_src>

<mosaic_0001>
module attributes {stable_mosaic.version = 11 : i64} {
  func.func @kernel(%arg0: i32, %arg1: memref<1x8x64xf32, #tpu.memory_space<vmem>>, %arg2: memref<1x8x8xf32, #tpu.memory_space<vmem>>, %arg3: memref<64x192xbf16, #tpu.memory_space<vmem>>, %arg4: memref<64x64xbf16, #tpu.memory_space<vmem>>, %arg5: memref<1x64xf32, #tpu.memory_space<vmem>>, %arg6: memref<64x256xbf16, #tpu.memory_space<vmem>>, %arg7: memref<256x64xbf16, #tpu.memory_space<vmem>>, %arg8: memref<1x64xf32, #tpu.memory_space<vmem>>, %arg9: memref<1x8x64xf32, #tpu.memory_space<vmem>>) attributes {dimension_semantics = [#tpu.dimension_semantics<parallel>], iteration_bounds = array<i64: 2>, scalar_prefetch = 0 : i64, scratch_operands = 0 : i64, tpu.core_type = #tpu.core_type<tc>, window_params = [{transform_indices = @transform_0, window_bounds = array<i64: 1, 8, 64>}, {transform_indices = @transform_1, window_bounds = array<i64: 1, 8, 8>}, {pipeline_mode = #tpu.pipeline_mode<synchronous>, transform_indices = @transform_2, window_bounds = array<i64: 64, 192>}, {pipeline_mode = #tpu.pipeline_mode<synchronous>, transform_indices = @transform_3, window_bounds = array<i64: 64, 64>}, {pipeline_mode = #tpu.pipeline_mode<synchronous>, transform_indices = @transform_4, window_bounds = array<i64: 1, 64>}, {pipeline_mode = #tpu.pipeline_mode<synchronous>, transform_indices = @transform_5, window_bounds = array<i64: 64, 256>}, {pipeline_mode = #tpu.pipeline_mode<synchronous>, transform_indices = @transform_6, window_bounds = array<i64: 256, 64>}, {pipeline_mode = #tpu.pipeline_mode<synchronous>, transform_indices = @transform_7, window_bounds = array<i64: 1, 64>}, {transform_indices = @transform_8, window_bounds = array<i64: 1, 8, 64>}]} {
    %c0 = arith.constant 0 : index
    %c0_0 = arith.constant 0 : index
    %c0_1 = arith.constant 0 : index
    %0 = vector.load %arg1[%c0, %c0_0, %c0_1] : memref<1x8x64xf32, #tpu.memory_space<vmem>>, vector<1x8x64xf32>
    %1 = vector.shape_cast %0 : vector<1x8x64xf32> to vector<8x64xf32>
    %c0_2 = arith.constant 0 : index
    %c0_3 = arith.constant 0 : index
    %c0_4 = arith.constant 0 : index
    %2 = vector.load %arg2[%c0_2, %c0_3, %c0_4] : memref<1x8x8xf32, #tpu.memory_space<vmem>>, vector<1x8x8xf32>
    %c0_5 = arith.constant 0 : index
    %c0_6 = arith.constant 0 : index
    %3 = vector.load %arg5[%c0_5, %c0_6] : memref<1x64xf32, #tpu.memory_space<vmem>>, vector<1x64xf32>
    %4 = arith.mulf %1, %1 : vector<8x64xf32>
    %cst = arith.constant dense<0.000000e+00> : vector<8xf32>
    %5 = vector.multi_reduction <add>, %4, %cst [1] : vector<8x64xf32> to vector<8xf32>
    %6 = vector.shape_cast %5 : vector<8xf32> to vector<8x1xf32>
    %cst_7 = arith.constant 6.400000e+01 : f32
    %7 = vector.broadcast %cst_7 : f32 to vector<8x1xf32>
    %8 = arith.divf %6, %7 : vector<8x1xf32>
    %cst_8 = arith.constant 9.99999996E-13 : f32
    %9 = vector.broadcast %cst_8 : f32 to vector<8x1xf32>
    %10 = arith.addf %8, %9 : vector<8x1xf32>
    %11 = math.rsqrt %10 : vector<8x1xf32>
    %12 = vector.broadcast %11 : vector<8x1xf32> to vector<8x64xf32>
    %13 = arith.mulf %1, %12 : vector<8x64xf32>
    %14 = vector.broadcast %3 : vector<1x64xf32> to vector<8x64xf32>
    %15 = arith.mulf %13, %14 : vector<8x64xf32>
    %16 = arith.truncf %15 : vector<8x64xf32> to vector<8x64xbf16>
    %c0_9 = arith.constant 0 : index
    %c0_10 = arith.constant 0 : index
    %17 = vector.load %arg3[%c0_9, %c0_10] : memref<64x192xbf16, #tpu.memory_space<vmem>>, vector<64x192xbf16>
    %cst_11 = arith.constant dense<0.000000e+00> : vector<8x192xf32>
    %18 = tpu.matmul %16, %17, %cst_11 {dimension_numbers = #tpu.dot_dimension_numbers<[1], [0], [0], [1], [0, 0, 1, 1], [], []>} : vector<8x64xbf16>, vector<64x192xbf16>, vector<8x192xf32> -> vector<8x192xf32>
    %19 = vector.extract_strided_slice %18 {offsets = [0, 0], sizes = [8, 32], strides = [1, 1]} : vector<8x192xf32> to vector<8x32xf32>
    %20 = vector.shape_cast %19 : vector<8x32xf32> to vector<1x8x32xf32>
    %21 = arith.truncf %20 : vector<1x8x32xf32> to vector<1x8x32xbf16>
    %22 = vector.extract_strided_slice %18 {offsets = [0, 64], sizes = [8, 32], strides = [1, 1]} : vector<8x192xf32> to vector<8x32xf32>
    %23 = vector.shape_cast %22 : vector<8x32xf32> to vector<1x8x32xf32>
    %24 = arith.truncf %23 : vector<1x8x32xf32> to vector<1x8x32xbf16>
    %25 = vector.extract_strided_slice %18 {offsets = [0, 128], sizes = [8, 32], strides = [1, 1]} : vector<8x192xf32> to vector<8x32xf32>
    %26 = vector.shape_cast %25 : vector<8x32xf32> to vector<1x8x32xf32>
    %27 = arith.truncf %26 : vector<1x8x32xf32> to vector<1x8x32xbf16>
    "tpu.trace_start"() <{level = 10 : i32, message = "bqd,bkd->bqk"}> : () -> ()
    %cst_12 = arith.constant dense<0.000000e+00> : vector<1x8x8xf32>
    %28 = tpu.matmul %21, %24, %cst_12 {dimension_numbers = #tpu.dot_dimension_numbers<[2], [2], [1], [1], [0, 0, 0, 1, 1, 1], [0], [0]>} : vector<1x8x32xbf16>, vector<1x8x32xbf16>, vector<1x8x8xf32> -> vector<1x8x8xf32>
    "tpu.trace_stop"() : () -> ()
    %cst_13 = arith.constant 0.176776692 : f32
    %29 = vector.broadcast %cst_13 : f32 to vector<1x8x8xf32>
    %30 = arith.mulf %28, %29 : vector<1x8x8xf32>
    %31 = arith.addf %30, %2 : vector<1x8x8xf32>
    %cst_14 = arith.constant dense<0xFF800000> : vector<1x8xf32>
    %32 = vector.multi_reduction <maximumf>, %31, %cst_14 [2] : vector<1x8x8xf32> to vector<1x8xf32>
    %33 = vector.shape_cast %32 : vector<1x8xf32> to vector<1x8x1xf32>
    %34 = vector.broadcast %33 : vector<1x8x1xf32> to vector<1x8x8xf32>
    %35 = arith.subf %31, %34 : vector<1x8x8xf32>
    %36 = math.exp %35 : vector<1x8x8xf32>
    %cst_15 = arith.constant dense<0.000000e+00> : vector<1x8xf32>
    %37 = vector.multi_reduction <add>, %36, %cst_15 [2] : vector<1x8x8xf32> to vector<1x8xf32>
    %38 = vector.shape_cast %37 : vector<1x8xf32> to vector<1x8x1xf32>
    %39 = tpu.reciprocal %38 {approx = true} : vector<1x8x1xf32> -> vector<1x8x1xf32>
    %40 = vector.broadcast %39 : vector<1x8x1xf32> to vector<1x8x8xf32>
    %41 = arith.mulf %36, %40 : vector<1x8x8xf32>
    %42 = arith.truncf %41 : vector<1x8x8xf32> to vector<1x8x8xbf16>
    "tpu.trace_start"() <{level = 10 : i32, message = "bqk,bkd->bqd"}> : () -> ()
    %cst_16 = arith.constant dense<0.000000e+00> : vector<1x8x32xf32>
    %43 = tpu.matmul %42, %27, %cst_16 {dimension_numbers = #tpu.dot_dimension_numbers<[2], [1], [1], [2], [0, 0, 0, 1, 1, 2], [0], [0]>} : vector<1x8x8xbf16>, vector<1x8x32xbf16>, vector<1x8x32xf32> -> vector<1x8x32xf32>
    "tpu.trace_stop"() : () -> ()
    %44 = vector.shape_cast %43 : vector<1x8x32xf32> to vector<8x32xf32>
    %45 = vector.extract_strided_slice %18 {offsets = [0, 32], sizes = [8, 32], strides = [1, 1]} : vector<8x192xf32> to vector<8x32xf32>
    %46 = vector.shape_cast %45 : vector<8x32xf32> to vector<1x8x32xf32>
    %47 = arith.truncf %46 : vector<1x8x32xf32> to vector<1x8x32xbf16>
    %48 = vector.extract_strided_slice %18 {offsets = [0, 96], sizes = [8, 32], strides = [1, 1]} : vector<8x192xf32> to vector<8x32xf32>
    %49 = vector.shape_cast %48 : vector<8x32xf32> to vector<1x8x32xf32>
    %50 = arith.truncf %49 : vector<1x8x32xf32> to vector<1x8x32xbf16>
    %51 = vector.extract_strided_slice %18 {offsets = [0, 160], sizes = [8, 32], strides = [1, 1]} : vector<8x192xf32> to vector<8x32xf32>
    %52 = vector.shape_cast %51 : vector<8x32xf32> to vector<1x8x32xf32>
    %53 = arith.truncf %52 : vector<1x8x32xf32> to vector<1x8x32xbf16>
    "tpu.trace_start"() <{level = 10 : i32, message = "bqd,bkd->bqk"}> : () -> ()
    %cst_17 = arith.constant dense<0.000000e+00> : vector<1x8x8xf32>
    %54 = tpu.matmul %47, %50, %cst_17 {dimension_numbers = #tpu.dot_dimension_numbers<[2], [2], [1], [1], [0, 0, 0, 1, 1, 1], [0], [0]>} : vector<1x8x32xbf16>, vector<1x8x32xbf16>, vector<1x8x8xf32> -> vector<1x8x8xf32>
    "tpu.trace_stop"() : () -> ()
    %cst_18 = arith.constant 0.176776692 : f32
    %55 = vector.broadcast %cst_18 : f32 to vector<1x8x8xf32>
    %56 = arith.mulf %54, %55 : vector<1x8x8xf32>
    %57 = arith.addf %56, %2 : vector<1x8x8xf32>
    %cst_19 = arith.constant dense<0xFF800000> : vector<1x8xf32>
    %58 = vector.multi_reduction <maximumf>, %57, %cst_19 [2] : vector<1x8x8xf32> to vector<1x8xf32>
    %59 = vector.shape_cast %58 : vector<1x8xf32> to vector<1x8x1xf32>
    %60 = vector.broadcast %59 : vector<1x8x1xf32> to vector<1x8x8xf32>
    %61 = arith.subf %57, %60 : vector<1x8x8xf32>
    %62 = math.exp %61 : vector<1x8x8xf32>
    %cst_20 = arith.constant dense<0.000000e+00> : vector<1x8xf32>
    %63 = vector.multi_reduction <add>, %62, %cst_20 [2] : vector<1x8x8xf32> to vector<1x8xf32>
    %64 = vector.shape_cast %63 : vector<1x8xf32> to vector<1x8x1xf32>
    %65 = tpu.reciprocal %64 {approx = true} : vector<1x8x1xf32> -> vector<1x8x1xf32>
    %66 = vector.broadcast %65 : vector<1x8x1xf32> to vector<1x8x8xf32>
    %67 = arith.mulf %62, %66 : vector<1x8x8xf32>
    %68 = arith.truncf %67 : vector<1x8x8xf32> to vector<1x8x8xbf16>
    "tpu.trace_start"() <{level = 10 : i32, message = "bqk,bkd->bqd"}> : () -> ()
    %cst_21 = arith.constant dense<0.000000e+00> : vector<1x8x32xf32>
    %69 = tpu.matmul %68, %53, %cst_21 {dimension_numbers = #tpu.dot_dimension_numbers<[2], [1], [1], [2], [0, 0, 0, 1, 1, 2], [0], [0]>} : vector<1x8x8xbf16>, vector<1x8x32xbf16>, vector<1x8x32xf32> -> vector<1x8x32xf32>
    "tpu.trace_stop"() : () -> ()
    %70 = vector.shape_cast %69 : vector<1x8x32xf32> to vector<8x32xf32>
    %71 = tpu.concatenate %44, %70 in 1 : vector<8x32xf32>, vector<8x32xf32> -> vector<8x64xf32>
    %72 = arith.truncf %71 : vector<8x64xf32> to vector<8x64xbf16>
    %c0_22 = arith.constant 0 : index
    %c0_23 = arith.constant 0 : index
    %73 = vector.load %arg4[%c0_22, %c0_23] : memref<64x64xbf16, #tpu.memory_space<vmem>>, vector<64x64xbf16>
    %cst_24 = arith.constant dense<0.000000e+00> : vector<8x64xf32>
    %74 = tpu.matmul %72, %73, %cst_24 {dimension_numbers = #tpu.dot_dimension_numbers<[1], [0], [0], [1], [0, 0, 1, 1], [], []>} : vector<8x64xbf16>, vector<64x64xbf16>, vector<8x64xf32> -> vector<8x64xf32>
    %75 = arith.addf %15, %74 : vector<8x64xf32>
    %c0_25 = arith.constant 0 : index
    %c0_26 = arith.constant 0 : index
    %76 = vector.load %arg8[%c0_25, %c0_26] : memref<1x64xf32, #tpu.memory_space<vmem>>, vector<1x64xf32>
    %77 = arith.mulf %75, %75 : vector<8x64xf32>
    %cst_27 = arith.constant dense<0.000000e+00> : vector<8xf32>
    %78 = vector.multi_reduction <add>, %77, %cst_27 [1] : vector<8x64xf32> to vector<8xf32>
    %79 = vector.shape_cast %78 : vector<8xf32> to vector<8x1xf32>
    %cst_28 = arith.constant 6.400000e+01 : f32
    %80 = vector.broadcast %cst_28 : f32 to vector<8x1xf32>
    %81 = arith.divf %79, %80 : vector<8x1xf32>
    %cst_29 = arith.constant 9.99999996E-13 : f32
    %82 = vector.broadcast %cst_29 : f32 to vector<8x1xf32>
    %83 = arith.addf %81, %82 : vector<8x1xf32>
    %84 = math.rsqrt %83 : vector<8x1xf32>
    %85 = vector.broadcast %84 : vector<8x1xf32> to vector<8x64xf32>
    %86 = arith.mulf %75, %85 : vector<8x64xf32>
    %87 = vector.broadcast %76 : vector<1x64xf32> to vector<8x64xf32>
    %88 = arith.mulf %86, %87 : vector<8x64xf32>
    %89 = arith.truncf %88 : vector<8x64xf32> to vector<8x64xbf16>
    %c0_30 = arith.constant 0 : index
    %c0_31 = arith.constant 0 : index
    %90 = vector.load %arg6[%c0_30, %c0_31] : memref<64x256xbf16, #tpu.memory_space<vmem>>, vector<64x256xbf16>
    %cst_32 = arith.constant dense<0.000000e+00> : vector<8x256xf32>
    %91 = tpu.matmul %89, %90, %cst_32 {dimension_numbers = #tpu.dot_dimension_numbers<[1], [0], [0], [1], [0, 0, 1, 1], [], []>} : vector<8x64xbf16>, vector<64x256xbf16>, vector<8x256xf32> -> vector<8x256xf32>
    %cst_33 = arith.constant 5.000000e-01 : f32
    %92 = vector.broadcast %cst_33 : f32 to vector<8x256xf32>
    %93 = arith.mulf %92, %91 : vector<8x256xf32>
    %cst_34 = arith.constant 0.707106769 : f32
    %94 = vector.broadcast %cst_34 : f32 to vector<8x256xf32>
    %95 = arith.mulf %91, %94 : vector<8x256xf32>
    %96 = math.erf %95 : vector<8x256xf32>
    %cst_35 = arith.constant 1.000000e+00 : f32
    %97 = vector.broadcast %cst_35 : f32 to vector<8x256xf32>
    %98 = arith.addf %97, %96 : vector<8x256xf32>
    %99 = arith.mulf %93, %98 : vector<8x256xf32>
    %100 = arith.truncf %99 : vector<8x256xf32> to vector<8x256xbf16>
    %c0_36 = arith.constant 0 : index
    %c0_37 = arith.constant 0 : index
    %101 = vector.load %arg7[%c0_36, %c0_37] : memref<256x64xbf16, #tpu.memory_space<vmem>>, vector<256x64xbf16>
    %cst_38 = arith.constant dense<0.000000e+00> : vector<8x64xf32>
    %102 = tpu.matmul %100, %101, %cst_38 {dimension_numbers = #tpu.dot_dimension_numbers<[1], [0], [0], [1], [0, 0, 1, 1], [], []>} : vector<8x256xbf16>, vector<256x64xbf16>, vector<8x64xf32> -> vector<8x64xf32>
    %103 = arith.addf %75, %102 : vector<8x64xf32>
    %104 = vector.shape_cast %103 : vector<8x64xf32> to vector<1x8x64xf32>
    %c0_39 = arith.constant 0 : index
    %c0_40 = arith.constant 0 : index
    %c0_41 = arith.constant 0 : index
    %105 = vector.load %arg9[%c0_39, %c0_40, %c0_41] : memref<1x8x64xf32, #tpu.memory_space<vmem>>, vector<1x8x64xf32>
    tpu.vector_store %arg9[%c0_39, %c0_40, %c0_41], %104 {strides = array<i32>} : memref<1x8x64xf32, #tpu.memory_space<vmem>>, vector<1x8x64xf32>,
    return
  }
  func.func @transform_0(%arg0: i32) -> (i32, i32, i32) {
    %c0_i32 = arith.constant 0 : i32
    %c0_i32_0 = arith.constant 0 : i32
    %c0_i32_1 = arith.constant 0 : i32
    return %arg0, %c0_i32, %c0_i32_0 : i32, i32, i32
  }
  func.func @transform_1(%arg0: i32) -> (i32, i32, i32) {
    %c0_i32 = arith.constant 0 : i32
    %c0_i32_0 = arith.constant 0 : i32
    %c0_i32_1 = arith.constant 0 : i32
    return %arg0, %c0_i32, %c0_i32_0 : i32, i32, i32
  }
  func.func @transform_2(%arg0: i32) -> (i32, i32) {
    %c0_i32 = arith.constant 0 : i32
    %c0_i32_0 = arith.constant 0 : i32
    %c0_i32_1 = arith.constant 0 : i32
    return %c0_i32, %c0_i32_0 : i32, i32
  }
  func.func @transform_3(%arg0: i32) -> (i32, i32) {
    %c0_i32 = arith.constant 0 : i32
    %c0_i32_0 = arith.constant 0 : i32
    %c0_i32_1 = arith.constant 0 : i32
    return %c0_i32, %c0_i32_0 : i32, i32
  }
  func.func @transform_4(%arg0: i32) -> (i32, i32) {
    %c0_i32 = arith.constant 0 : i32
    %c0_i32_0 = arith.constant 0 : i32
    %c0_i32_1 = arith.constant 0 : i32
    return %c0_i32, %c0_i32_0 : i32, i32
  }
  func.func @transform_5(%arg0: i32) -> (i32, i32) {
    %c0_i32 = arith.constant 0 : i32
    %c0_i32_0 = arith.constant 0 : i32
    %c0_i32_1 = arith.constant 0 : i32
    return %c0_i32, %c0_i32_0 : i32, i32
  }
  func.func @transform_6(%arg0: i32) -> (i32, i32) {
    %c0_i32 = arith.constant 0 : i32
    %c0_i32_0 = arith.constant 0 : i32
    %c0_i32_1 = arith.constant 0 : i32
    return %c0_i32, %c0_i32_0 : i32, i32
  }
  func.func @transform_7(%arg0: i32) -> (i32, i32) {
    %c0_i32 = arith.constant 0 : i32
    %c0_i32_0 = arith.constant 0 : i32
    %c0_i32_1 = arith.constant 0 : i32
    return %c0_i32, %c0_i32_0 : i32, i32
  }
  func.func @transform_8(%arg0: i32) -> (i32, i32, i32) {
    %c0_i32 = arith.constant 0 : i32
    %c0_i32_0 = arith.constant 0 : i32
    %c0_i32_1 = arith.constant 0 : i32
    return %arg0, %c0_i32, %c0_i32_0 : i32, i32, i32
  }
}

</mosaic_0001>

<bundles_post_ra>
// kernel: tpu_custom_call.1
= control target key start
LH: loop header
LB: loop body
LE: loop exit
PB: predicated region body
PF: predicated region fallthrough
CT: control target
= control target key end

     0   :  { %13 = vsyncpa [#allocation3], 0  ;;  %s1734_s0 = inlined_call_operand.vmem [shape: f32[2,8,64], index: 0, kind: input, shape index: {}]   ;;  %s1735_s1 = inlined_call_operand.vmem [shape: f32[2,8,8], index: 1, kind: input, shape index: {}]   ;;  %s1736_s2 = inlined_call_operand.vmem [shape: bf16[64,192], index: 2, kind: input, shape index: {}]   ;;  %s1737_s3 = inlined_call_operand.vmem [shape: bf16[64,64], index: 3, kind: input, shape index: {}]   ;;  %s1738_s4 = inlined_call_operand.vmem [shape: f32[1,64], index: 4, kind: input, shape index: {}]   ;;  %s1739_s5 = inlined_call_operand.vmem [shape: bf16[64,256], index: 5, kind: input, shape index: {}]   ;;  %s1740_s6 = inlined_call_operand.vmem [shape: bf16[256,64], index: 6, kind: input, shape index: {}]   ;;  %s1741_s7 = inlined_call_operand.vmem [shape: f32[1,64], index: 7, kind: input, shape index: {}]   ;;  %s1742_s8 = inlined_call_operand.hbm [shape: f32[2,8,64], index: 8, kind: output, shape index: {}]  }
   0x1   :  { %15 = vsyncpa [#allocation3 + $0x1], 0  ;;  %s1463_s27 = smov 0   ;;  %s1465_s28 = smov 0  }
   0x2   :  { %s1467_s29 = smov 0   ;;  %s1469_s30 = smov 0  }
   0x3 LB: > { %s1484_s9 = sadd.s32 4294967295, %s1409_s30   ;;  %s1117_s10 = sadd.s32 4294967294, %s1409_s30   ;;  %s1409_s30 = sphi %s1469_s30, %s1748_s30   ;;  %s1405_s29 = sphi %s1467_s29, %s1747_s29   ;;  %s1401_s28 = sphi %s1465_s28, %s1746_s28   ;;  %s1397_s27 = sphi %s1463_s27, %s1745_s27  }
   0x4   : > { %s1488_s11 = sadd.s32 1, %s1409_s30   ;;  %s206_s12 = sadd.s32 1, %s1405_s29 }
   0x5   : > { %s203_s13 = ssub.s32 %s1409_s30, %s1488_s11  ;;  %p216_p0 = scmp.ne.s32.totalorder %s1405_s29, %s1401_s28 }
   0x6   : > { %p204_p1 = scmp.eq.s32.totalorder %s203_s13, 0  ;;  %p217_p2 = scmp.eq.s32.totalorder %s1484_s9, 1 }
   0x7   : > { %p222_p3 = scmp.ne.s32.totalorder %s1401_s28, %s1397_s27  ;;  %p223_p4 = scmp.eq.s32.totalorder %s1117_s10, 1 }
   0x8   : > { %s1499_s14 = scalar_select %p204_p1, %s1405_s29, %s206_s12  }
   0x9   : > { %p1501_p5 = por %p217_p2, %p216_p0  ;;  %p1505_p6 = por %p223_p4, %p222_p3 }
   0xa   : > { %p1120_p7 = scmp.ge.s32.totalorder %s1409_s30, 1  ;;  %p273_p8 = scmp.lt.s32.totalorder %s1409_s30, 3 }
   0xc   : > { %p274_p9 = pnand %p1120_p7, %p273_p8 }
   0xd   : > { %p310_p10 = scmp.lt.s32.totalorder (!%p274_p9), %s1484_s9, 1  ;;  %s1414_s13 = smov (!%p274_p9), 32  }
   0xe   : > { %277 = sbr.rel (%p274_p9) target bundleno = 2127 (0x84f), region = 52  ;;  %s1415_s19 = smov (!%p274_p9), 64  }
   0xf   : > { %s1416_s20 = smov (!%p274_p9), 96   ;;  %s307_s12 = sand.u32 (!%p274_p9), 1, %s1401_s28  }
  0x13   : > { %s1513_s17 = scalar_select %p310_p10, %s1484_s9, 1  ;;  %vm323_vm0 = vcmask 523264   ;;  %v1289_v3 = vld [vmem:[%s1736_s2 + $0x34] ss:$8 sps:$4 sm:$0xff]   ;;  %v1291_v4 = vld [vmem:[%s1736_s2 + $0x30] ss:$8 sps:$4 sm:$0xff]  }
  0x14   : > { %v1292_v5 = vld [vmem:[%s1736_s2 + $0x24] ss:$8 sps:$4 sm:$0xff]   ;;  %399 = vmatprep.subr.bf16.mxu1 %v1289_v3  ;;  %v1294_v6 = vld [vmem:[%s1736_s2 + $0x20] ss:$8 sps:$4 sm:$0xff]   ;;  %v1411_v7 = vmov 0   ;;  %v1412_v20 = vmov 0.0  }
  0x15   : > { %s1122_s18 = sshll.u32 %s1513_s17, 3  ;;  %400 = vmatpush1.bf16.msra.mxu1 %v1291_v4  ;;  %423 = vmatprep.mubr.bf16.mxu1 %v1411_v7  ;;  %v1295_v8 = vld [vmem:[%s1736_s2 + $0x14] ss:$8 sps:$4 sm:$0xff]   ;;  %v1297_v9 = vld [vmem:[%s1736_s2 + $0x10] ss:$8 sps:$4 sm:$0xff]   ;;  %vm1413_vm1 = vmmov 0  }
  0x16   : > { %s313_s21 = scalar_lea.vmem %s1734_s0, %s1122_s18  ;;  %401 = vmatprep.subr.bf16.mxu1 %v1292_v5  ;;  %v1298_v10 = vld [vmem:[%s1736_s2 + $0x4] ss:$8 sps:$4 sm:$0xff]   ;;  %v1300_v11 = vld [vmem:[%s1736_s2] ss:$8 sps:$4 sm:$0xff]   ;;  %1220 = vmatprep.subr.bf16.mxu0 %v1412_v20  ;;  %vm437_vm2 = vcmask 261120   ;;  %vm502_vm3 = vcmask 1043456   ;;  %s317_s23 = scalar_lea.vmem %s1735_s1, %s1122_s18 }
  0x17   : > { %v319_v0 = vld [vmem:[%s313_s21] sm:$0xff]  ;;  %1222 = vmatprep.mubr.msk.bf16.mxu0 %vm1413_vm1, %v1412_v20  ;;  %vm486_vm4 = vcmask 64512   ;;  %v1301_v4 = vld [vmem:[%s1737_s3 + $0x18] sm:$0xff]   ;;  %v1302_v5 = vld [vmem:[%s1737_s3 + $0x10] sm:$0xff]   ;;  %s1033_s18 = scalar_lea.sflag [#allocation3], %s307_s12 }
  0x18   : > { %v322_v1 = vmul.f32 %v319_v0, %v319_v0  ;;  %v1124_v16 = vld [vmem:[%s1738_s4] ss:$0 sm:$0xff] }
  0x19   : > { %402 = vmatpush1.bf16.msra.mxu1 %v1294_v6  ;;  %v320_v35 = vld [vmem:[%s317_s23] sm:$0xff]  ;;  %v1303_v6 = vld [vmem:[%s1737_s3 + $0x8] sm:$0xff]  }
  0x1a   : > { %v324_v2 = vsel %vm323_vm0, %v322_v1, 0.0  ;;  %403 = vmatprep.subr.bf16.mxu1 %v1295_v8 }
  0x1b   : > { %325 = vadd.xlane.f32.xlu0 %v324_v2 }
  0x1d   : > { %404 = vmatpush1.bf16.msra.mxu1 %v1297_v9 }
  0x1e   : > { %405 = vmatprep.subr.bf16.mxu1 %v1298_v10 }
  0x21   : > { %406 = vmatpush1.bf16.msra.mxu1 %v1300_v11 }
  0x22   : > { %1208 = vmatprep.subr.bf16.mxu1 %v1412_v20 }
  0xa4   : > { %v326_v12 = vpop.xlane.xlu0 %325 }
  0xa5   : > { %v328_v13 = vmul.f32 0.015625, %v326_v12 }
  0xa7   : > { %v329_v14 = vadd.f32 1e-12, %v328_v13 }
  0xa9   : > { %1333 = vrsqrt.f32 %v329_v14 }
  0xb6   : > { %v1334_v15 = vpop.eup %1333 }
  0xb7   : > { %v331_v17 = vmul.f32 %v1334_v15, %v319_v0 }
  0xb9   : > { %v1550_v18 = vmul.f32 %v1124_v16, %v331_v17 }
  0xbb   : > { %v339_v19 = vpack.c.bf16 %v1550_v18, %v1550_v18 }
  0xbd   : > { %1133 = vmatmul.mubr.msk.bf16.vlgmr.msra.gmra.mxu1 %vm323_vm0, %v339_v19 }
  0xbe   : > { %1210 = vmatprep.mubr.msk.bf16.mxu1 %vm1413_vm1, %v1412_v20 }
 0x17d   : > { %v425_v21 = vpop.f32.mrf.mxu1 }
 0x17e   : > { %v432_v22 = vpack.c.bf16 %v425_v21, %v425_v21 }
 0x17f   : > { %v427_v23 = vpop.f32.mrf.mxu1 }
 0x180   : > { %548 = vrot.lane.b32.xlu1 %v432_v22, %s1414_s13  ;;  %435 = vrot.lane.b32.xlu0 %v432_v22, %s1415_s19  ;;  %v433_v30 = vpack.c.bf16 %v427_v23, %v427_v23  ;;  %s1121_s19 = sshll.u32 %s307_s12, 3 }
 0x181   : > { %v429_v24 = vpop.f32.mrf.mxu1 }
 0x182   : > { %v504_v32 = vsel %vm502_vm3, %v433_v30, 0 }
 0x183   : > { %v430_v25 = vpop.f32.mrf.mxu1 }
 0x184   : > { %546 = vrot.lane.b32.xlu1 %v432_v22, %s1416_s20 }
 0x1f2   : > { %v549_v26 = vpop.permute.xlu1 %548  ;;  %v436_v27 = vpop.permute.xlu0 %435 }
 0x1f3   : > { %v442_v28 = vsel %vm437_vm2, %v436_v27, 0  ;;  %v554_v29 = vsel %vm437_vm2, %v549_v26, 0  ;;  %v1305_v27 = vld [vmem:[%s1739_s5 + $0x30] ss:$8 sps:$4 sm:$0xff]  }
 0x1f4   : > { %1209 = vmatpush3.bf16.xpose.msra.mxu1 %v442_v28  ;;  %1221 = vmatpush3.bf16.xpose.msra.mxu0 %v554_v29  ;;  %v1307_v28 = vld [vmem:[%s1739_s5 + $0x34] ss:$8 sps:$4 sm:$0xff]   ;;  %v1308_v29 = vld [vmem:[%s1739_s5 + $0x20] ss:$8 sps:$4 sm:$0xff]  }
 0x1f5   : > { %1214 = vmatprep.subr.bf16.mxu1 %v1412_v20  ;;  %1232 = vmatprep.subr.bf16.mxu0 %v1412_v20 }
 0x1f6   : > { %v547_v31 = vpop.permute.xlu1 %546 }
 0x1fb   : > { %1211 = vmatmul.mubr.msk.bf16.vlgmr.msra.gmra.mxu1 %vm437_vm2, %v432_v22  ;;  %1223 = vmatmul.mubr.msk.bf16.vlgmr.msra.gmra.mxu0 %vm437_vm2, %v547_v31  ;;  %v1311_v31 = vld [vmem:[%s1739_s5 + $0x10] ss:$8 sps:$4 sm:$0xff]  }
 0x1fc   : > { %1215 = vmatpush3.bf16.msra.mxu1 %v504_v32  ;;  %1216 = vmatprep.mubr.msk.bf16.mxu1 %vm1413_vm1, %v1412_v20  ;;  %v1316_v32 = vld [vmem:[%s1739_s5 + $0x4] ss:$8 sps:$4 sm:$0xff]  }
 0x1fd   : > { %1226 = vmatprep.subr.bf16.mxu1 %v1412_v20  ;;  %1240 = vmatprep.mubr.msk.bf16.mxu0 %vm1413_vm1, %v1412_v20 }
 0x1fe   : > { %1233 = vmatpush3.bf16.msra.mxu0 %v1301_v4 }
 0x1ff   : > { %1234 = vmatprep.subr.bf16.mxu0 %v1412_v20 }
 0x202   : > { %1235 = vmatpush3.bf16.msra.mxu0 %v1302_v5 }
 0x203   : > { %1236 = vmatprep.subr.bf16.mxu0 %v1412_v20 }
 0x206   : > { %1237 = vmatpush3.bf16.msra.mxu0 %v1303_v6 }
 0x207   : > { %1238 = vmatprep.subr.bf16.mxu0 %v1412_v20 }
 0x2bb   : > { %v478_v33 = vpop.f32.mrf.mxu1  ;;  %v590_v34 = vpop.f32.mrf.mxu0 }
 0x2bc   : > { %v484_v36 = vmul.f32 0.17677669, %v478_v33  ;;  %v596_v37 = vmul.f32 0.17677669, %v590_v34  ;;  %v1314_v33 = vld [vmem:[%s1739_s5] ss:$8 sps:$4 sm:$0xff]  }
 0x2bd   : > { %v1212_v38 = vpop.f32.mrf.mxu1  ;;  %v1224_v39 = vpop.f32.mrf.mxu0  ;;  %v1317_v34 = vld [vmem:[%s1740_s6 + $0x78] sm:$0xff]  }
 0x2be   : > { %v597_v40 = vadd.f32 %v596_v37, %v320_v35  ;;  %v485_v41 = vadd.f32 %v484_v36, %v320_v35  ;;  %v1318_v35 = vld [vmem:[%s1740_s6 + $0x38] sm:$0xff]   ;;  %v1319_v36 = vld [vmem:[%s1740_s6 + $0x70] sm:$0xff]  }
 0x2bf   : > { %v481_v42 = vpop.f32.mrf.mxu1  ;;  %v593_v43 = vpop.f32.mrf.mxu0  ;;  %v1320_v37 = vld [vmem:[%s1740_s6 + $0x30] sm:$0xff]  }
 0x2c0   : > { %v598_v44 = vsel %vm486_vm4, %v597_v40, -inf  ;;  %v487_v45 = vsel %vm486_vm4, %v485_v41, -inf  ;;  %v1143_v42 = vld [vmem:[%s1741_s7] ss:$0 sm:$0xff] }
 0x2c1   : > { %v1225_v46 = vpop.f32.mrf.mxu0  ;;  %599 = vmax.xlane.f32.xlu0 %v598_v44  ;;  %488 = vmax.xlane.f32.xlu1 %v487_v45  ;;  %v1213_v47 = vpop.f32.mrf.mxu1 }
 0x2c2   : > { %v1321_v46 = vld [vmem:[%s1740_s6 + $0x68] sm:$0xff]  }
 0x2c3   : > { %v1322_v47 = vld [vmem:[%s1740_s6 + $0x28] sm:$0xff]  }
 0x34a   : > { %v600_v48 = vpop.xlane.xlu0 %599  ;;  %v489_v49 = vpop.xlane.xlu1 %488 }
 0x34b   : > { %v601_v50 = vsub.f32 %v597_v40, %v600_v48  ;;  %v490_v51 = vsub.f32 %v485_v41, %v489_v49  ;;  %v1323_v48 = vld [vmem:[%s1740_s6 + $0x60] sm:$0xff]  }
 0x34c   : > { %v1324_v49 = vld [vmem:[%s1740_s6 + $0x20] sm:$0xff]  }
 0x34d   : > { %v491_v52 = vmul.f32 1.442695, %v490_v51  ;;  %v602_v53 = vmul.f32 1.442695, %v601_v50  ;;  %v1325_v50 = vld [vmem:[%s1740_s6 + $0x58] sm:$0xff]  }
 0x34e   : > { %v1326_v51 = vld [vmem:[%s1740_s6 + $0x18] sm:$0xff]  }
 0x34f   : > { %1335 = vpow2.f32 %v491_v52  ;;  %v1327_v52 = vld [vmem:[%s1740_s6 + $0x50] sm:$0xff]  }
 0x350   : > { %1337 = vpow2.f32 %v602_v53  ;;  %v1328_v53 = vld [vmem:[%s1740_s6 + $0x10] sm:$0xff]  }
 0x35c   : > { %v1336_v54 = vpop.eup %1335 }
 0x35d   : > { %v493_v55 = vsel %vm486_vm4, %v1336_v54, 0.0  ;;  %v1338_v56 = vpop.eup %1337 }
 0x35e   : > { %494 = vadd.xlane.f32.xlu1 %v493_v55  ;;  %v604_v57 = vsel %vm486_vm4, %v1338_v56, 0.0  ;;  %v1330_v55 = vld [vmem:[%s1740_s6 + $0x8] sm:$0xff]  }
 0x362   : > { %605 = vadd.xlane.f32.xlu1 %v604_v57  ;;  %v1332_v57 = vld [vmem:[%s1740_s6] sm:$0xff]  }
 0x373   : > { %611 = vrot.lane.b32.xlu1 %v433_v30, %s1416_s20  ;;  %v1313_v30 = vld [vmem:[%s1739_s5 + $0x14] ss:$8 sps:$4 sm:$0xff]   ;;  %s309_s20 = scalar_lea.vmem [#allocation2], %s1121_s19 }
 0x374   : > { %s1046_s21 = sshll.u32 %s309_s20, 4  ;;  %s1047_s21 = int_to_ptr.vmem [resolvable:$true] %s1046_s21 }
 0x375   : > { %s1349_s24 = scalar_lea.vmem %s1047_s21, 128 }
 0x376   : > { %p1350_p11 = scmp.ne.s32.totalorder %s1047_s21, %s1349_s24 }
 0x378   : > { %p1351_p12 = pnand %p1350_p11, %p1501_p5 }
 0x37a   : > { %p1352_p13 = pneg %p1351_p12 }
 0x3e7   : > { %v495_v58 = vpop.xlane.xlu1 %494 }
 0x3e8   : > { %1339 = vrcp.f32 %v495_v58 }
 0x3eb   : > { %v606_v59 = vpop.xlane.xlu1 %605 }
 0x3ec   : > { %1341 = vrcp.f32 %v606_v59 }
 0x3ef   : > { %v612_v62 = vpop.permute.xlu1 %611 }
 0x3f0   : > { %v617_v1 = vsel %vm502_vm3, %v612_v62, 0 }
 0x3f5   : > { %v1340_v60 = vpop.eup %1339 }
 0x3f6   : > { %v497_v61 = vmul.f32 %v1340_v60, %v1336_v54  ;;  %v1329_v54 = vld [vmem:[%s1740_s6 + $0x48] sm:$0xff]  }
 0x3f8   : > { %v498_v63 = vpack.c.bf16 %v497_v61, %v497_v61 }
 0x3f9   : > { %v1342_v0 = vpop.eup %1341 }
 0x3fa   : > { %1217 = vmatmul.mubr.msk.bf16.vlgmr.msra.gmra.mxu1 %vm486_vm4, %v498_v63  ;;  %v608_v2 = vmul.f32 %v1342_v0, %v1338_v56  ;;  %v1331_v56 = vld [vmem:[%s1740_s6 + $0x40] sm:$0xff]  }
 0x3fb   : > { %1227 = vmatpush3.bf16.msra.mxu1 %v617_v1  ;;  %1228 = vmatprep.mubr.msk.bf16.mxu1 %vm1413_vm1, %v1412_v20 }
 0x3fc   : > { %v609_v3 = vpack.c.bf16 %v608_v2, %v608_v2  ;;  %817 = vmatprep.subr.bf16.mxu1 %v1307_v28 }
 0x402   : > { %1229 = vmatmul.mubr.msk.bf16.vlgmr.msra.gmra.mxu1 %vm486_vm4, %v609_v3 }
 0x403   : > { %841 = vmatprep.mubr.bf16.mxu1 %v1411_v7  ;;  %v1304_v7 = vld [vmem:[%s1737_s3] sm:$0xff]   ;;  %818 = vmatpush1.bf16.msra.mxu1 %v1305_v27 }
 0x404   : > { %1239 = vmatpush3.bf16.msra.mxu0 %v1304_v7 }
 0x405   : > { %1186 = vmatprep.subr.bf16.mxu0 %v1317_v34 }
 0x4ba   : > { %v540_v8 = vpop.f32.mrf.mxu1 }
 0x4bc   : > { %v1218_v9 = vpop.f32.mrf.mxu1 }
 0x4be   : > { %v543_v10 = vpop.f32.mrf.mxu1 }
 0x4c0   : > { %v1219_v11 = vpop.f32.mrf.mxu1 }
 0x4c2   : > { %v653_v12 = vpop.f32.mrf.mxu1 }
 0x4c3   : > { %660 = vrot.lane.b32.xlu0 %v653_v12, %s1414_s13  ;;  %s1170_s13 = sshll.u32 %s1484_s9, 7  ;;  %s1417_s9 = smov [#allocation2]  }
 0x4c4   : > { %v1230_v13 = vpop.f32.mrf.mxu1  ;;  %s1698_s17 = scalar_lea.hbm %s1742_s8, %s1170_s13  ;;  %s1353_s25 = sshll.u32 %s1417_s9, 4  ;;  %s1354_s25 = int_to_ptr.vmem [resolvable:$false] %s1353_s25 }
 0x4c5   : > { %s1355_s26 = scalar_lea.vmem %s1354_s25, 256  ;;  %p1356_p0 = scmp.lt.s32.totalorder %s1047_s21, %s1354_s25 }
 0x4c6   : > { %v656_v14 = vpop.f32.mrf.mxu1  ;;  %p1357_p1 = scmp.lt.s32.totalorder %s1355_s26, %s1349_s24 }
 0x4c8   : > { %v1231_v15 = vpop.f32.mrf.mxu1  ;;  %p1358_p2 = por %p1357_p1, %p1356_p0 }
 0x4ca   : > { %p1359_p3 = pnand %p1358_p2, %p1352_p13 }
 0x535   : > { %v661_v16 = vpop.permute.xlu0 %660 }
 0x536   : > { %v663_v17 = vsel %vm437_vm2, %v540_v8, %v661_v16 }
 0x537   : > { %v664_v19 = vpack.c.bf16 %v663_v17, %v663_v17 }
 0x539   : > { %1241 = vmatmul.mubr.msk.bf16.vlgmr.msra.gmra.mxu0 %vm323_vm0, %v664_v19 }
 0x53a   : > { %1187 = vmatpush3.bf16.msra.mxu0 %v1318_v35 }
 0x53b   : > { %1188 = vmatprep.subr.bf16.mxu0 %v1319_v36 }
 0x53e   : > { %1189 = vmatpush3.bf16.msra.mxu0 %v1320_v37 }
 0x53f   : > { %1190 = vmatprep.subr.bf16.mxu0 %v1321_v46 }
 0x542   : > { %1191 = vmatpush3.bf16.msra.mxu0 %v1322_v47 }
 0x543   : > { %1192 = vmatprep.subr.bf16.mxu0 %v1323_v48 }
 0x546   : > { %1193 = vmatpush3.bf16.msra.mxu0 %v1324_v49 }
 0x547   : > { %1194 = vmatprep.subr.bf16.mxu0 %v1325_v50 }
 0x54a   : > { %1195 = vmatpush3.bf16.msra.mxu0 %v1326_v51 }
 0x54b   : > { %1196 = vmatprep.subr.bf16.mxu0 %v1327_v52 }
 0x54e   : > { %1197 = vmatpush3.bf16.msra.mxu0 %v1328_v53 }
 0x54f   : > { %1198 = vmatprep.subr.bf16.mxu0 %v1329_v54 }
 0x552   : > { %1199 = vmatpush3.bf16.msra.mxu0 %v1330_v55 }
 0x553   : > { %1200 = vmatprep.subr.bf16.mxu0 %v1331_v56 }
 0x556   : > { %1201 = vmatpush3.bf16.msra.mxu0 %v1332_v57 }
 0x5f9   : > { %v734_v20 = vpop.f32.mrf.mxu0 }
 0x5fa   : > { %v1610_v21 = vadd.f32 %v734_v20, %v1550_v18  ;;  %v1310_v18 = vld [vmem:[%s1739_s5 + $0x24] ss:$8 sps:$4 sm:$0xff]  }
 0x5fb   : > { %v1242_v22 = vpop.f32.mrf.mxu0  ;;  %819 = vmatprep.subr.bf16.mxu1 %v1310_v18 }
 0x5fc   : > { %v742_v23 = vmul.f32 %v1610_v21, %v1610_v21  ;;  %820 = vmatpush1.bf16.msra.mxu1 %v1308_v29 }
 0x5fd   : > { %v737_v24 = vpop.f32.mrf.mxu0  ;;  %821 = vmatprep.subr.bf16.mxu1 %v1313_v30 }
 0x5fe   : > { %v743_v25 = vsel %vm323_vm0, %v742_v23, 0.0 }
 0x5ff   : > { %744 = vadd.xlane.f32.xlu1 %v743_v25  ;;  %v1243_v26 = vpop.f32.mrf.mxu0 }
 0x600   : > { %822 = vmatpush1.bf16.msra.mxu1 %v1311_v31 }
 0x601   : > { %823 = vmatprep.subr.bf16.mxu1 %v1316_v32 }
 0x604   : > { %824 = vmatpush1.bf16.msra.mxu1 %v1314_v33 }
 0x688   : > { %v745_v38 = vpop.xlane.xlu1 %744 }
 0x689   : > { %v746_v39 = vmul.f32 0.015625, %v745_v38 }
 0x68b   : > { %v747_v40 = vadd.f32 1e-12, %v746_v39 }
 0x68d   : > { %1343 = vrsqrt.f32 %v747_v40 }
 0x69a   : > { %v1344_v41 = vpop.eup %1343 }
 0x69b   : > { %v749_v43 = vmul.f32 %v1344_v41, %v1610_v21 }
 0x69d   : > { %v756_v44 = vmul.f32 %v1143_v42, %v749_v43 }
 0x69f   : > { %v757_v45 = vpack.c.bf16 %v756_v44, %v756_v44 }
 0x6a1   : > { %1152 = vmatmul.mubr.msk.bf16.vlgmr.msra.gmra.mxu1 %vm323_vm0, %v757_v45 }
 0x761   : > { %v843_v58 = vpop.f32.mrf.mxu1 }
 0x762   : > { %v852_v59 = vmul.f32 0.70710677, %v843_v58  ;;  %v850_v3 = vmul.f32 0.5, %v843_v58 }
 0x763   : > { %v845_v60 = vpop.f32.mrf.mxu1 }
 0x764   : > { %1345 = verf.f32 %v852_v59  ;;  %v853_v61 = vmul.f32 0.70710677, %v845_v60  ;;  %v851_v4 = vmul.f32 0.5, %v845_v60 }
 0x765   : > { %v847_v62 = vpop.f32.mrf.mxu1 }
 0x766   : > { %1347 = verf.f32 %v853_v61 }
 0x767   : > { %v848_v63 = vpop.f32.mrf.mxu1 }
 0x771   : > { %v1346_v0 = vpop.eup %1345 }
 0x772   : > { %v856_v1 = vadd.f32 1.0, %v1346_v0 }
 0x773   : > { %v1348_v2 = vpop.eup %1347 }
 0x774   : > { %v857_v5 = vadd.f32 1.0, %v1348_v2  ;;  %v858_v6 = vmul.f32 %v856_v1, %v850_v3 }
 0x776   : > { %v859_v7 = vmul.f32 %v857_v5, %v851_v4  ;;  %v860_v9 = vpack.c.bf16 %v858_v6, %v858_v6 }
 0x778   : > { %v861_v8 = vpack.c.bf16 %v859_v7, %v859_v7 }
 0x77a   : > { %1022 = vmatprep.mubr.bf16.mxu0 %v861_v8 }
 0x77b   : > { %1023 = vmatmul.mubr.bf16.vlgmr.msra.gmra.mxu0 %v860_v9 }
 0x83b   : > { %v1202_v10 = vpop.f32.mrf.mxu0 }
 0x83d   : > { %v1203_v11 = vpop.f32.mrf.mxu0 }
 0x83e   : > { %v1204_v12 = vadd.f32 %v1203_v11, %v1202_v10 }
 0x83f   : > { %v1205_v13 = vpop.f32.mrf.mxu0 }
 0x840   : > { %v1030_v14 = vadd.f32 %v1204_v12, %v1610_v21 }
 0x841   : > { %v1206_v15 = vpop.f32.mrf.mxu0 }
 0x842   : > { %1031 = vst.msk [vmem:[%s309_s20] sm:$0xff] %vm323_vm0, %v1030_v14 }
 0x843   : > { %1362 = shalt.err (!%p1359_p3)
}
 0x844   : > { %s1363_s10 = scalar_lea.hbm %s1698_s17, 128  ;;  %s1367_s13 = scalar_lea.hbm %s1742_s8, 256 }
 0x845   : > { %p1364_p4 = scmp.ne.s32.totalorder %s1698_s17, %s1363_s10  ;;  %p1368_p9 = scmp.lt.s32.totalorder %s1698_s17, %s1742_s8 }
 0x846   : > { %p1369_p10 = scmp.lt.s32.totalorder %s1367_s13, %s1363_s10 }
 0x847   : > { %p1365_p7 = pnand %p1364_p4, %p1501_p5 }
 0x848   : > { %p1370_p11 = por %p1369_p10, %p1368_p9 }
 0x849   : > { %p1366_p8 = pneg %p1365_p7 }
 0x84b   : > { %p1371_p12 = pnand %p1370_p11, %p1366_p8 }
 0x84d   : > { %1374 = shalt.err (!%p1371_p12)
}
 0x84e   : > { %1244 = dma.vmem_to_hbm [thread:$0]  (%p1501_p5), %s1047_s21, 128, %s1698_s17, %s1033_s18  }
 0x84f PF: > { %p1250_p13 = scmp.ge.s32.totalorder %s1409_s30, 2  ;;  %s1058_s23 = sand.u32 1, %s1397_s27  }
 0x850   : > { %s1059_s24 = scalar_lea.sflag [#allocation3], %s1058_s23 }
 0x851   : > { %p1247_p0 = pnand %p1250_p13, %p1505_p6 }
 0x853   : > { %p1248_p1 = pneg %p1247_p0 }
 0x855   : > { %1392 = dma.done.wait (%p1248_p1), %s1059_s24, 128  }
 0x856   : > { %1394 = vsyncadd (%p1248_p1), %s1059_s24, 4294967168  ;;  %p18_p2 = scmp.ge.s32.totalorder %s1488_s11, 4   ;;  %s1745_s27 = smov %s1401_s28 }
 0x857   : > { %s1746_s28 = smov %s1405_s29  ;;  %s1747_s29 = smov %s1499_s14 }
 0x858   : > { %s1748_s30 = smov %s1488_s11  ;;  %20 = sbr.rel (!%p18_p2) target bundleno = 3 (0x3), region = 90 }
 0x85d   :  { %1064 = vsyncpa [#allocation3], 1 }
 0x85e   :  { %1066 = vsyncpa [#allocation3 + $0x1], 1 }

</bundles_post_ra>
